<compile_context>
chip_gen: v7x
topology: tpu7x:2x2x1
jax: 0.10.0
libtpu: 0.0.40
codegen_flags: <defaults>
</compile_context>

<pallas_src>
import functools

import jax
import jax.numpy as jnp
from jax import lax
from jax.experimental import pallas as pl
from jax.experimental.pallas import tpu as pltpu


def _lif_kernel(x_ref, out_ref, mem_ref, *, tau, alpha, vth, t_chunk):
    """One grid step: t_chunk time steps for one spatial tile.

    x_ref   : (t_chunk, r_tile, lanes) VMEM input tile
    out_ref : (t_chunk, r_tile, lanes) VMEM output tile (spikes)
    mem_ref : (r_tile, lanes) f32 VMEM scratch carrying the membrane potential
              across time-chunk grid steps for the current spatial tile.
    """
    # Grid = (spatial_tiles, time_chunks); time is innermost & sequential.
    @pl.when(pl.program_id(1) == 0)
    def _():
        mem_ref[...] = jnp.zeros_like(mem_ref)

    def step(t, mem):
        mem = mem * tau + x_ref[t] * alpha
        p = mem > vth                                          # ZIF forward
        out_ref[t] = jnp.where(p, 1.0, 0.0).astype(out_ref.dtype)
        return jnp.where(p, 0.0, mem)                          # reset where spiked

    mem_ref[...] = lax.fori_loop(0, t_chunk, step, mem_ref[...], unroll=True)


def lif_spike_forward(x, tau=0.5, alpha=1.0, vth=1.0, *,
                      lane_tile=512, row_tile=256, time_chunk=8,
                      out_dtype=jnp.float32):
    """x: [T, B, C, H, W] -> spikes [T, B, C, H, W] (out_dtype, values 0/1)."""
    orig_shape = x.shape
    T = int(orig_shape[0])
    N = 1
    for d in orig_shape[1:]:
        N *= int(d)

    xf = x.reshape(T, N).astype(jnp.float32)

    # ---- lane-dense layout [T, R, lanes], lanes a multiple of 128 -----------
    lanes = min(int(lane_tile), max(128, ((N + 127) // 128) * 128))
    n_pad = pl.cdiv(N, lanes) * lanes
    if n_pad != N:
        xf = jnp.pad(xf, ((0, 0), (0, n_pad - N)))
    R = n_pad // lanes
    x3 = xf.reshape(T, R, lanes)

    # Row tile: full R if small (full-dim block is always legal),
    # else a sublane-aligned multiple of 8.
    if R <= row_tile:
        r_tile = R
    else:
        r_tile = max(8, (int(row_tile) // 8) * 8)
    num_r_tiles = pl.cdiv(R, r_tile)

    t_chunk = min(int(time_chunk), T)
    num_t_chunks = pl.cdiv(T, t_chunk)

    # ---- VMEM budget: 2x double-buffered in + out blocks + mem scratch ------
    in_block_bytes = t_chunk * r_tile * lanes * 4
    out_block_bytes = t_chunk * r_tile * lanes * jnp.dtype(out_dtype).itemsize
    vmem_limit = int(2 * in_block_bytes + 2 * out_block_bytes
                     + r_tile * lanes * 4 + (2 << 20))
    vmem_limit = max(min(vmem_limit, 48 << 20), 16 << 20)  # stay under v7x 64 MiB

    kernel = functools.partial(
        _lif_kernel,
        tau=float(tau), alpha=float(alpha), vth=float(vth), t_chunk=t_chunk,
    )

    out3 = pl.pallas_call(
        kernel,
        out_shape=jax.ShapeDtypeStruct((T, R, lanes), out_dtype),
        grid_spec=pltpu.PrefetchScalarGridSpec(
            num_scalar_prefetch=0,
            grid=(num_r_tiles, num_t_chunks),        # spatial outer, time inner
            in_specs=[
                pl.BlockSpec((t_chunk, r_tile, lanes), lambda r, t: (t, r, 0)),
            ],
            out_specs=pl.BlockSpec((t_chunk, r_tile, lanes), lambda r, t: (t, r, 0)),
            scratch_shapes=[pltpu.VMEM((r_tile, lanes), jnp.float32)],
        ),
        compiler_params=pltpu.CompilerParams(
            # spatial tiles are independent (megacore split on v7x);
            # time carries the membrane potential -> sequential.
            dimension_semantics=("parallel", "arbitrary"),
            vmem_limit_bytes=vmem_limit,
        ),
    )(x3)

    out = out3.reshape(T, n_pad)[:, :N].reshape(orig_shape)
    return out


def lif_spike_ref(x, tau=0.5, alpha=1.0, vth=1.0):
    """Pure-JAX reference matching the PyTorch forward."""
    T = x.shape[0]
    mem = jnp.zeros(x.shape[1:], dtype=jnp.float32)
    spikes = []
    for t in range(T):
        mem = mem * tau + x[t] * alpha
        spike = (mem - vth > 0.0).astype(jnp.float32)
        mem = (1.0 - spike) * mem
        spikes.append(spike)
    return jnp.stack(spikes, axis=0)


if __name__ == "__main__":
    # LIFSpike.__init__ defaults used by the forward: tau=0.5, alpha=1.0, Vth=1.0.
    # (thresh and gama do not affect the forward pass.)
    tau, alpha, vth = 0.5, 1.0, 1.0

    key = jax.random.PRNGKey(0)
    T, B, C, H, W = 8, 2, 4, 16, 16
    x = jax.random.normal(key, (T, B, C, H, W), dtype=jnp.float32) * 2.0

    out = lif_spike_forward(x, tau=tau, alpha=alpha, vth=vth)
    out = jax.block_until_ready(out)

    ref = lif_spike_ref(x, tau=tau, alpha=alpha, vth=vth)
    assert out.shape == (T, B, C, H, W)
    assert out.dtype == jnp.float32
    assert jnp.array_equal(out, ref), "Pallas output does not match reference"

    print("KERNEL_OK")
</pallas_src>

<mosaic_0001>
module attributes {stable_mosaic.version = 11 : i64} {
  func.func @_lif_kernel(%arg0: i32, %arg1: i32, %arg2: memref<8x4x512xf32, #tpu.memory_space<vmem>>, %arg3: memref<8x4x512xf32, #tpu.memory_space<vmem>>, %arg4: memref<4x512xf32, #tpu.memory_space<vmem>>) attributes {dimension_semantics = [#tpu.dimension_semantics<parallel>, #tpu.dimension_semantics<arbitrary>], iteration_bounds = array<i64: 1, 1>, scalar_prefetch = 0 : i64, scratch_operands = 1 : i64, tpu.core_type = #tpu.core_type<tc>, window_params = [{transform_indices = @transform_0, window_bounds = array<i64: 8, 4, 512>}, {transform_indices = @transform_1, window_bounds = array<i64: 8, 4, 512>}]} {
    %c0_i32 = arith.constant 0 : i32
    %0 = arith.cmpi eq, %arg1, %c0_i32 : i32
    %1 = arith.extui %0 : i1 to i32
    %c0_i32_0 = arith.constant 0 : i32
    %2 = arith.cmpi ne, %1, %c0_i32_0 : i32
    scf.if %2 {
      %cst_84 = arith.constant 0.000000e+00 : f32
      %157 = vector.broadcast %cst_84 : f32 to vector<4x512xf32>
      %c0_85 = arith.constant 0 : index
      %c0_86 = arith.constant 0 : index
      %158 = vector.load %arg4[%c0_85, %c0_86] : memref<4x512xf32, #tpu.memory_space<vmem>>, vector<4x512xf32>
      tpu.vector_store %arg4[%c0_85, %c0_86], %157 {strides = array<i32>} : memref<4x512xf32, #tpu.memory_space<vmem>>, vector<4x512xf32>,
    } else {
    }
    %c0 = arith.constant 0 : index
    %c0_1 = arith.constant 0 : index
    %3 = vector.load %arg4[%c0, %c0_1] : memref<4x512xf32, #tpu.memory_space<vmem>>, vector<4x512xf32>
    %c0_i32_2 = arith.constant 0 : i32
    %cst = arith.constant 5.000000e-01 : f32
    %4 = vector.broadcast %cst : f32 to vector<4x512xf32>
    %5 = arith.mulf %3, %4 : vector<4x512xf32>
    %6 = arith.index_cast %c0_i32_2 : i32 to index
    %c0_3 = arith.constant 0 : index
    %c0_4 = arith.constant 0 : index
    %7 = vector.load %arg2[%6, %c0_3, %c0_4] : memref<8x4x512xf32, #tpu.memory_space<vmem>>, vector<1x4x512xf32>
    %8 = vector.shape_cast %7 : vector<1x4x512xf32> to vector<4x512xf32>
    %cst_5 = arith.constant 1.000000e+00 : f32
    %9 = vector.broadcast %cst_5 : f32 to vector<4x512xf32>
    %10 = arith.mulf %8, %9 : vector<4x512xf32>
    %11 = arith.addf %5, %10 : vector<4x512xf32>
    %cst_6 = arith.constant 1.000000e+00 : f32
    %12 = vector.broadcast %cst_6 : f32 to vector<4x512xf32>
    %13 = arith.cmpf ogt, %11, %12 : vector<4x512xf32>
    %cst_7 = arith.constant 1.000000e+00 : f32
    %cst_8 = arith.constant 0.000000e+00 : f32
    %14 = vector.broadcast %cst_7 : f32 to vector<4x512xf32>
    %15 = vector.broadcast %cst_8 : f32 to vector<4x512xf32>
    %16 = arith.select %13, %14, %15 : vector<4x512xi1>, vector<4x512xf32>
    %17 = arith.index_cast %c0_i32_2 : i32 to index
    %c0_9 = arith.constant 0 : index
    %c0_10 = arith.constant 0 : index
    %18 = vector.load %arg3[%17, %c0_9, %c0_10] : memref<8x4x512xf32, #tpu.memory_space<vmem>>, vector<1x4x512xf32>
    %19 = vector.shape_cast %18 : vector<1x4x512xf32> to vector<4x512xf32>
    %20 = vector.shape_cast %16 : vector<4x512xf32> to vector<1x4x512xf32>
    tpu.vector_store %arg3[%17, %c0_9, %c0_10], %20 {strides = array<i32>} : memref<8x4x512xf32, #tpu.memory_space<vmem>>, vector<1x4x512xf32>,
    %cst_11 = arith.constant 0.000000e+00 : f32
    %21 = vector.broadcast %cst_11 : f32 to vector<4x512xf32>
    %22 = arith.select %13, %21, %11 : vector<4x512xi1>, vector<4x512xf32>
    %c1_i32 = arith.constant 1 : i32
    %cst_12 = arith.constant 5.000000e-01 : f32
    %23 = vector.broadcast %cst_12 : f32 to vector<4x512xf32>
    %24 = arith.mulf %22, %23 : vector<4x512xf32>
    %25 = arith.index_cast %c1_i32 : i32 to index
    %c0_13 = arith.constant 0 : index
    %c0_14 = arith.constant 0 : index
    %26 = vector.load %arg2[%25, %c0_13, %c0_14] : memref<8x4x512xf32, #tpu.memory_space<vmem>>, vector<1x4x512xf32>
    %27 = vector.shape_cast %26 : vector<1x4x512xf32> to vector<4x512xf32>
    %cst_15 = arith.constant 1.000000e+00 : f32
    %28 = vector.broadcast %cst_15 : f32 to vector<4x512xf32>
    %29 = arith.mulf %27, %28 : vector<4x512xf32>
    %30 = arith.addf %24, %29 : vector<4x512xf32>
    %cst_16 = arith.constant 1.000000e+00 : f32
    %31 = vector.broadcast %cst_16 : f32 to vector<4x512xf32>
    %32 = arith.cmpf ogt, %30, %31 : vector<4x512xf32>
    %cst_17 = arith.constant 1.000000e+00 : f32
    %cst_18 = arith.constant 0.000000e+00 : f32
    %33 = vector.broadcast %cst_17 : f32 to vector<4x512xf32>
    %34 = vector.broadcast %cst_18 : f32 to vector<4x512xf32>
    %35 = arith.select %32, %33, %34 : vector<4x512xi1>, vector<4x512xf32>
    %36 = arith.index_cast %c1_i32 : i32 to index
    %c0_19 = arith.constant 0 : index
    %c0_20 = arith.constant 0 : index
    %37 = vector.load %arg3[%36, %c0_19, %c0_20] : memref<8x4x512xf32, #tpu.memory_space<vmem>>, vector<1x4x512xf32>
    %38 = vector.shape_cast %37 : vector<1x4x512xf32> to vector<4x512xf32>
    %39 = vector.shape_cast %35 : vector<4x512xf32> to vector<1x4x512xf32>
    tpu.vector_store %arg3[%36, %c0_19, %c0_20], %39 {strides = array<i32>} : memref<8x4x512xf32, #tpu.memory_space<vmem>>, vector<1x4x512xf32>,
    %cst_21 = arith.constant 0.000000e+00 : f32
    %40 = vector.broadcast %cst_21 : f32 to vector<4x512xf32>
    %41 = arith.select %32, %40, %30 : vector<4x512xi1>, vector<4x512xf32>
    %c2_i32 = arith.constant 2 : i32
    %cst_22 = arith.constant 5.000000e-01 : f32
    %42 = vector.broadcast %cst_22 : f32 to vector<4x512xf32>
    %43 = arith.mulf %41, %42 : vector<4x512xf32>
    %44 = arith.index_cast %c2_i32 : i32 to index
    %c0_23 = arith.constant 0 : index
    %c0_24 = arith.constant 0 : index
    %45 = vector.load %arg2[%44, %c0_23, %c0_24] : memref<8x4x512xf32, #tpu.memory_space<vmem>>, vector<1x4x512xf32>
    %46 = vector.shape_cast %45 : vector<1x4x512xf32> to vector<4x512xf32>
    %cst_25 = arith.constant 1.000000e+00 : f32
    %47 = vector.broadcast %cst_25 : f32 to vector<4x512xf32>
    %48 = arith.mulf %46, %47 : vector<4x512xf32>
    %49 = arith.addf %43, %48 : vector<4x512xf32>
    %cst_26 = arith.constant 1.000000e+00 : f32
    %50 = vector.broadcast %cst_26 : f32 to vector<4x512xf32>
    %51 = arith.cmpf ogt, %49, %50 : vector<4x512xf32>
    %cst_27 = arith.constant 1.000000e+00 : f32
    %cst_28 = arith.constant 0.000000e+00 : f32
    %52 = vector.broadcast %cst_27 : f32 to vector<4x512xf32>
    %53 = vector.broadcast %cst_28 : f32 to vector<4x512xf32>
    %54 = arith.select %51, %52, %53 : vector<4x512xi1>, vector<4x512xf32>
    %55 = arith.index_cast %c2_i32 : i32 to index
    %c0_29 = arith.constant 0 : index
    %c0_30 = arith.constant 0 : index
    %56 = vector.load %arg3[%55, %c0_29, %c0_30] : memref<8x4x512xf32, #tpu.memory_space<vmem>>, vector<1x4x512xf32>
    %57 = vector.shape_cast %56 : vector<1x4x512xf32> to vector<4x512xf32>
    %58 = vector.shape_cast %54 : vector<4x512xf32> to vector<1x4x512xf32>
    tpu.vector_store %arg3[%55, %c0_29, %c0_30], %58 {strides = array<i32>} : memref<8x4x512xf32, #tpu.memory_space<vmem>>, vector<1x4x512xf32>,
    %cst_31 = arith.constant 0.000000e+00 : f32
    %59 = vector.broadcast %cst_31 : f32 to vector<4x512xf32>
    %60 = arith.select %51, %59, %49 : vector<4x512xi1>, vector<4x512xf32>
    %c3_i32 = arith.constant 3 : i32
    %cst_32 = arith.constant 5.000000e-01 : f32
    %61 = vector.broadcast %cst_32 : f32 to vector<4x512xf32>
    %62 = arith.mulf %60, %61 : vector<4x512xf32>
    %63 = arith.index_cast %c3_i32 : i32 to index
    %c0_33 = arith.constant 0 : index
    %c0_34 = arith.constant 0 : index
    %64 = vector.load %arg2[%63, %c0_33, %c0_34] : memref<8x4x512xf32, #tpu.memory_space<vmem>>, vector<1x4x512xf32>
    %65 = vector.shape_cast %64 : vector<1x4x512xf32> to vector<4x512xf32>
    %cst_35 = arith.constant 1.000000e+00 : f32
    %66 = vector.broadcast %cst_35 : f32 to vector<4x512xf32>
    %67 = arith.mulf %65, %66 : vector<4x512xf32>
    %68 = arith.addf %62, %67 : vector<4x512xf32>
    %cst_36 = arith.constant 1.000000e+00 : f32
    %69 = vector.broadcast %cst_36 : f32 to vector<4x512xf32>
    %70 = arith.cmpf ogt, %68, %69 : vector<4x512xf32>
    %cst_37 = arith.constant 1.000000e+00 : f32
    %cst_38 = arith.constant 0.000000e+00 : f32
    %71 = vector.broadcast %cst_37 : f32 to vector<4x512xf32>
    %72 = vector.broadcast %cst_38 : f32 to vector<4x512xf32>
    %73 = arith.select %70, %71, %72 : vector<4x512xi1>, vector<4x512xf32>
    %74 = arith.index_cast %c3_i32 : i32 to index
    %c0_39 = arith.constant 0 : index
    %c0_40 = arith.constant 0 : index
    %75 = vector.load %arg3[%74, %c0_39, %c0_40] : memref<8x4x512xf32, #tpu.memory_space<vmem>>, vector<1x4x512xf32>
    %76 = vector.shape_cast %75 : vector<1x4x512xf32> to vector<4x512xf32>
    %77 = vector.shape_cast %73 : vector<4x512xf32> to vector<1x4x512xf32>
    tpu.vector_store %arg3[%74, %c0_39, %c0_40], %77 {strides = array<i32>} : memref<8x4x512xf32, #tpu.memory_space<vmem>>, vector<1x4x512xf32>,
    %cst_41 = arith.constant 0.000000e+00 : f32
    %78 = vector.broadcast %cst_41 : f32 to vector<4x512xf32>
    %79 = arith.select %70, %78, %68 : vector<4x512xi1>, vector<4x512xf32>
    %c4_i32 = arith.constant 4 : i32
    %cst_42 = arith.constant 5.000000e-01 : f32
    %80 = vector.broadcast %cst_42 : f32 to vector<4x512xf32>
    %81 = arith.mulf %79, %80 : vector<4x512xf32>
    %82 = arith.index_cast %c4_i32 : i32 to index
    %c0_43 = arith.constant 0 : index
    %c0_44 = arith.constant 0 : index
    %83 = vector.load %arg2[%82, %c0_43, %c0_44] : memref<8x4x512xf32, #tpu.memory_space<vmem>>, vector<1x4x512xf32>
    %84 = vector.shape_cast %83 : vector<1x4x512xf32> to vector<4x512xf32>
    %cst_45 = arith.constant 1.000000e+00 : f32
    %85 = vector.broadcast %cst_45 : f32 to vector<4x512xf32>
    %86 = arith.mulf %84, %85 : vector<4x512xf32>
    %87 = arith.addf %81, %86 : vector<4x512xf32>
    %cst_46 = arith.constant 1.000000e+00 : f32
    %88 = vector.broadcast %cst_46 : f32 to vector<4x512xf32>
    %89 = arith.cmpf ogt, %87, %88 : vector<4x512xf32>
    %cst_47 = arith.constant 1.000000e+00 : f32
    %cst_48 = arith.constant 0.000000e+00 : f32
    %90 = vector.broadcast %cst_47 : f32 to vector<4x512xf32>
    %91 = vector.broadcast %cst_48 : f32 to vector<4x512xf32>
    %92 = arith.select %89, %90, %91 : vector<4x512xi1>, vector<4x512xf32>
    %93 = arith.index_cast %c4_i32 : i32 to index
    %c0_49 = arith.constant 0 : index
    %c0_50 = arith.constant 0 : index
    %94 = vector.load %arg3[%93, %c0_49, %c0_50] : memref<8x4x512xf32, #tpu.memory_space<vmem>>, vector<1x4x512xf32>
    %95 = vector.shape_cast %94 : vector<1x4x512xf32> to vector<4x512xf32>
    %96 = vector.shape_cast %92 : vector<4x512xf32> to vector<1x4x512xf32>
    tpu.vector_store %arg3[%93, %c0_49, %c0_50], %96 {strides = array<i32>} : memref<8x4x512xf32, #tpu.memory_space<vmem>>, vector<1x4x512xf32>,
    %cst_51 = arith.constant 0.000000e+00 : f32
    %97 = vector.broadcast %cst_51 : f32 to vector<4x512xf32>
    %98 = arith.select %89, %97, %87 : vector<4x512xi1>, vector<4x512xf32>
    %c5_i32 = arith.constant 5 : i32
    %cst_52 = arith.constant 5.000000e-01 : f32
    %99 = vector.broadcast %cst_52 : f32 to vector<4x512xf32>
    %100 = arith.mulf %98, %99 : vector<4x512xf32>
    %101 = arith.index_cast %c5_i32 : i32 to index
    %c0_53 = arith.constant 0 : index
    %c0_54 = arith.constant 0 : index
    %102 = vector.load %arg2[%101, %c0_53, %c0_54] : memref<8x4x512xf32, #tpu.memory_space<vmem>>, vector<1x4x512xf32>
    %103 = vector.shape_cast %102 : vector<1x4x512xf32> to vector<4x512xf32>
    %cst_55 = arith.constant 1.000000e+00 : f32
    %104 = vector.broadcast %cst_55 : f32 to vector<4x512xf32>
    %105 = arith.mulf %103, %104 : vector<4x512xf32>
    %106 = arith.addf %100, %105 : vector<4x512xf32>
    %cst_56 = arith.constant 1.000000e+00 : f32
    %107 = vector.broadcast %cst_56 : f32 to vector<4x512xf32>
    %108 = arith.cmpf ogt, %106, %107 : vector<4x512xf32>
    %cst_57 = arith.constant 1.000000e+00 : f32
    %cst_58 = arith.constant 0.000000e+00 : f32
    %109 = vector.broadcast %cst_57 : f32 to vector<4x512xf32>
    %110 = vector.broadcast %cst_58 : f32 to vector<4x512xf32>
    %111 = arith.select %108, %109, %110 : vector<4x512xi1>, vector<4x512xf32>
    %112 = arith.index_cast %c5_i32 : i32 to index
    %c0_59 = arith.constant 0 : index
    %c0_60 = arith.constant 0 : index
    %113 = vector.load %arg3[%112, %c0_59, %c0_60] : memref<8x4x512xf32, #tpu.memory_space<vmem>>, vector<1x4x512xf32>
    %114 = vector.shape_cast %113 : vector<1x4x512xf32> to vector<4x512xf32>
    %115 = vector.shape_cast %111 : vector<4x512xf32> to vector<1x4x512xf32>
    tpu.vector_store %arg3[%112, %c0_59, %c0_60], %115 {strides = array<i32>} : memref<8x4x512xf32, #tpu.memory_space<vmem>>, vector<1x4x512xf32>,
    %cst_61 = arith.constant 0.000000e+00 : f32
    %116 = vector.broadcast %cst_61 : f32 to vector<4x512xf32>
    %117 = arith.select %108, %116, %106 : vector<4x512xi1>, vector<4x512xf32>
    %c6_i32 = arith.constant 6 : i32
    %cst_62 = arith.constant 5.000000e-01 : f32
    %118 = vector.broadcast %cst_62 : f32 to vector<4x512xf32>
    %119 = arith.mulf %117, %118 : vector<4x512xf32>
    %120 = arith.index_cast %c6_i32 : i32 to index
    %c0_63 = arith.constant 0 : index
    %c0_64 = arith.constant 0 : index
    %121 = vector.load %arg2[%120, %c0_63, %c0_64] : memref<8x4x512xf32, #tpu.memory_space<vmem>>, vector<1x4x512xf32>
    %122 = vector.shape_cast %121 : vector<1x4x512xf32> to vector<4x512xf32>
    %cst_65 = arith.constant 1.000000e+00 : f32
    %123 = vector.broadcast %cst_65 : f32 to vector<4x512xf32>
    %124 = arith.mulf %122, %123 : vector<4x512xf32>
    %125 = arith.addf %119, %124 : vector<4x512xf32>
    %cst_66 = arith.constant 1.000000e+00 : f32
    %126 = vector.broadcast %cst_66 : f32 to vector<4x512xf32>
    %127 = arith.cmpf ogt, %125, %126 : vector<4x512xf32>
    %cst_67 = arith.constant 1.000000e+00 : f32
    %cst_68 = arith.constant 0.000000e+00 : f32
    %128 = vector.broadcast %cst_67 : f32 to vector<4x512xf32>
    %129 = vector.broadcast %cst_68 : f32 to vector<4x512xf32>
    %130 = arith.select %127, %128, %129 : vector<4x512xi1>, vector<4x512xf32>
    %131 = arith.index_cast %c6_i32 : i32 to index
    %c0_69 = arith.constant 0 : index
    %c0_70 = arith.constant 0 : index
    %132 = vector.load %arg3[%131, %c0_69, %c0_70] : memref<8x4x512xf32, #tpu.memory_space<vmem>>, vector<1x4x512xf32>
    %133 = vector.shape_cast %132 : vector<1x4x512xf32> to vector<4x512xf32>
    %134 = vector.shape_cast %130 : vector<4x512xf32> to vector<1x4x512xf32>
    tpu.vector_store %arg3[%131, %c0_69, %c0_70], %134 {strides = array<i32>} : memref<8x4x512xf32, #tpu.memory_space<vmem>>, vector<1x4x512xf32>,
    %cst_71 = arith.constant 0.000000e+00 : f32
    %135 = vector.broadcast %cst_71 : f32 to vector<4x512xf32>
    %136 = arith.select %127, %135, %125 : vector<4x512xi1>, vector<4x512xf32>
    %c7_i32 = arith.constant 7 : i32
    %cst_72 = arith.constant 5.000000e-01 : f32
    %137 = vector.broadcast %cst_72 : f32 to vector<4x512xf32>
    %138 = arith.mulf %136, %137 : vector<4x512xf32>
    %139 = arith.index_cast %c7_i32 : i32 to index
    %c0_73 = arith.constant 0 : index
    %c0_74 = arith.constant 0 : index
    %140 = vector.load %arg2[%139, %c0_73, %c0_74] : memref<8x4x512xf32, #tpu.memory_space<vmem>>, vector<1x4x512xf32>
    %141 = vector.shape_cast %140 : vector<1x4x512xf32> to vector<4x512xf32>
    %cst_75 = arith.constant 1.000000e+00 : f32
    %142 = vector.broadcast %cst_75 : f32 to vector<4x512xf32>
    %143 = arith.mulf %141, %142 : vector<4x512xf32>
    %144 = arith.addf %138, %143 : vector<4x512xf32>
    %cst_76 = arith.constant 1.000000e+00 : f32
    %145 = vector.broadcast %cst_76 : f32 to vector<4x512xf32>
    %146 = arith.cmpf ogt, %144, %145 : vector<4x512xf32>
    %cst_77 = arith.constant 1.000000e+00 : f32
    %cst_78 = arith.constant 0.000000e+00 : f32
    %147 = vector.broadcast %cst_77 : f32 to vector<4x512xf32>
    %148 = vector.broadcast %cst_78 : f32 to vector<4x512xf32>
    %149 = arith.select %146, %147, %148 : vector<4x512xi1>, vector<4x512xf32>
    %150 = arith.index_cast %c7_i32 : i32 to index
    %c0_79 = arith.constant 0 : index
    %c0_80 = arith.constant 0 : index
    %151 = vector.load %arg3[%150, %c0_79, %c0_80] : memref<8x4x512xf32, #tpu.memory_space<vmem>>, vector<1x4x512xf32>
    %152 = vector.shape_cast %151 : vector<1x4x512xf32> to vector<4x512xf32>
    %153 = vector.shape_cast %149 : vector<4x512xf32> to vector<1x4x512xf32>
    tpu.vector_store %arg3[%150, %c0_79, %c0_80], %153 {strides = array<i32>} : memref<8x4x512xf32, #tpu.memory_space<vmem>>, vector<1x4x512xf32>,
    %cst_81 = arith.constant 0.000000e+00 : f32
    %154 = vector.broadcast %cst_81 : f32 to vector<4x512xf32>
    %155 = arith.select %146, %154, %144 : vector<4x512xi1>, vector<4x512xf32>
    %c8_i32 = arith.constant 8 : i32
    %c0_82 = arith.constant 0 : index
    %c0_83 = arith.constant 0 : index
    %156 = vector.load %arg4[%c0_82, %c0_83] : memref<4x512xf32, #tpu.memory_space<vmem>>, vector<4x512xf32>
    tpu.vector_store %arg4[%c0_82, %c0_83], %155 {strides = array<i32>} : memref<4x512xf32, #tpu.memory_space<vmem>>, vector<4x512xf32>,
    return
  }
  func.func @transform_0(%arg0: i32, %arg1: i32) -> (i32, i32, i32) {
    %c0_i32 = arith.constant 0 : i32
    %c0_i32_0 = arith.constant 0 : i32
    return %arg1, %arg0, %c0_i32 : i32, i32, i32
  }
  func.func @transform_1(%arg0: i32, %arg1: i32) -> (i32, i32, i32) {
    %c0_i32 = arith.constant 0 : i32
    %c0_i32_0 = arith.constant 0 : i32
    return %arg1, %arg0, %c0_i32 : i32, i32, i32
  }
}

</mosaic_0001>

<bundles_post_ra>
// kernel: tpu_custom_call.1
= control target key start
LH: loop header
LB: loop body
LE: loop exit
PB: predicated region body
PF: predicated region fallthrough
CT: control target
= control target key end

     0   :  { %6 = vsyncpa [#allocation4], 0  ;;  %s290_s0 = inlined_call_operand.hbm [shape: f32[8,4,512], index: 0, kind: input, shape index: {}]   ;;  %s291_s1 = inlined_call_operand.hbm [shape: f32[8,4,512], index: 1, kind: output, shape index: {}]  }
   0x1   :  { %7 = vsyncpa [#allocation5], 0  ;;  %s229_s6 = smov [#allocation3]   ;;  %s181_s10 = scalar_lea.hbm %s290_s0, 2048 }
   0x2   :  { %s13_s7 = sshll.u32 %s229_s6, 4  ;;  %p182_p0 = scmp.ne.s32.totalorder %s290_s0, %s181_s10  ;;  %s14_s7 = int_to_ptr.vmem [resolvable:$true] %s13_s7 }
   0x3   :  { %p185_p1 = scmp.lt.u32.totalorder %s181_s10, %s290_s0 }
   0x5   :  { %p187_p2 = pnand %p185_p1, %p182_p0 }
   0x7   :  { %190 = shalt.err (!%p187_p2)
}
   0x8   :  { %s191_s15 = scalar_lea.vmem %s14_s7, 2048  ;;  %p196_p4 = scmp.lt.s32.totalorder %s14_s7, %s14_s7 }
   0x9   :  { %p192_p3 = scmp.ne.s32.totalorder %s14_s7, %s191_s15  ;;  %p197_p5 = scmp.lt.s32.totalorder %s191_s15, %s191_s15 }
   0xb   :  { %p198_p6 = por %p197_p5, %p196_p4 }
   0xd   :  { %p199_p7 = pnand %p198_p6, %p192_p3 }
   0xf   :  { %202 = shalt.err (!%p199_p7)
}
  0x10   :  { %s230_s16 = smov 256   ;;  %s231_s17 = smov 16  }
  0x11   :  { %19 = dma.hbm_to_vmem [thread:$0]  %s290_s0, 2048, %s14_s7, [#allocation4], %s230_s16, %s230_s16, %s231_s17  }
  0x12   :  { %225 = dma.done.wait [#allocation4], 2048  }
  0x13   :  { %226 = vsyncadd [#allocation4], 4294965248  ;;  %v33_v0 = vld [vmem:[#allocation3] sm:$0xff]  ;;  %v34_v1 = vld [vmem:[#allocation3 + $0x8] sm:$0xff]  ;;  %v232_v2 = vmov 0.0   ;;  %s233_s0 = smov [#allocation6]  }
  0x14   :  { %vm37_vm0 = vcmp.gt.f32.partialorder %v33_v0, 1.0  ;;  %vm38_vm1 = vcmp.gt.f32.partialorder %v34_v1, 1.0  ;;  %v48_v7 = vld [vmem:[#allocation3 + $0x10] sm:$0xff]  ;;  %v49_v8 = vld [vmem:[#allocation3 + $0x18] sm:$0xff]  ;;  %v64_v17 = vld [vmem:[#allocation3 + $0x20] sm:$0xff]  ;;  %s164_s20 = sshll.u32 %s233_s0, 4  ;;  %s165_s20 = int_to_ptr.vmem [resolvable:$true] %s164_s20 }
  0x15   :  { %v39_v3 = vsel %vm37_vm0, 1.0, %v232_v2  ;;  %v43_v4 = vsel %vm37_vm0, 0.0, %v33_v0  ;;  %v40_v5 = vsel %vm38_vm1, 1.0, %v232_v2  ;;  %v44_v6 = vsel %vm38_vm1, 0.0, %v34_v1  ;;  %v65_v18 = vld [vmem:[#allocation3 + $0x28] sm:$0xff]  ;;  %v80_v27 = vld [vmem:[#allocation3 + $0x30] sm:$0xff]  ;;  %p208_p9 = scmp.lt.s32.totalorder %s165_s20, %s165_s20 }
  0x16   :  { %41 = vst [vmem:[#allocation6] sm:$0xff] %v39_v3  ;;  %v45_v9 = vmul.f32 0.5, %v43_v4  ;;  %42 = vst [vmem:[#allocation6 + $0x8] sm:$0xff] %v40_v5  ;;  %v46_v10 = vmul.f32 0.5, %v44_v6  ;;  %v81_v28 = vld [vmem:[#allocation3 + $0x38] sm:$0xff]  ;;  %v96_v37 = vld [vmem:[#allocation3 + $0x40] sm:$0xff] }
  0x17   :  { %v97_v38 = vld [vmem:[#allocation3 + $0x48] sm:$0xff]  ;;  %v112_v47 = vld [vmem:[#allocation3 + $0x50] sm:$0xff]  ;;  %v113_v48 = vld [vmem:[#allocation3 + $0x58] sm:$0xff]  ;;  %s203_s21 = scalar_lea.vmem %s165_s20, 2048 }
  0x18   :  { %v50_v11 = vadd.f32 %v48_v7, %v45_v9  ;;  %v51_v12 = vadd.f32 %v49_v8, %v46_v10  ;;  %v128_v57 = vld [vmem:[#allocation3 + $0x60] sm:$0xff]  ;;  %v129_v58 = vld [vmem:[#allocation3 + $0x68] sm:$0xff]  ;;  %v144_v4 = vld [vmem:[#allocation3 + $0x70] sm:$0xff]  ;;  %p204_p8 = scmp.ne.s32.totalorder %s165_s20, %s203_s21  ;;  %p209_p10 = scmp.lt.s32.totalorder %s203_s21, %s203_s21 }
  0x19   :  { %v145_v5 = vld [vmem:[#allocation3 + $0x78] sm:$0xff] }
  0x1a   :  { %vm52_vm2 = vcmp.gt.f32.partialorder %v50_v11, 1.0  ;;  %vm53_vm3 = vcmp.gt.f32.partialorder %v51_v12, 1.0  ;;  %p210_p11 = por %p209_p10, %p208_p9 }
  0x1b   :  { %v54_v13 = vsel %vm52_vm2, 1.0, %v232_v2  ;;  %v59_v14 = vsel %vm52_vm2, 0.0, %v50_v11  ;;  %v55_v15 = vsel %vm53_vm3, 1.0, %v232_v2  ;;  %v60_v16 = vsel %vm53_vm3, 0.0, %v51_v12 }
  0x1c   :  { %57 = vst [vmem:[#allocation6 + $0x10] sm:$0xff] %v54_v13  ;;  %v61_v19 = vmul.f32 0.5, %v59_v14  ;;  %58 = vst [vmem:[#allocation6 + $0x18] sm:$0xff] %v55_v15  ;;  %v62_v20 = vmul.f32 0.5, %v60_v16  ;;  %p211_p12 = pnand %p210_p11, %p204_p8 }
  0x1e   :  { %v66_v21 = vadd.f32 %v64_v17, %v61_v19  ;;  %v67_v22 = vadd.f32 %v65_v18, %v62_v20 }
  0x20   :  { %vm68_vm4 = vcmp.gt.f32.partialorder %v66_v21, 1.0  ;;  %vm69_vm5 = vcmp.gt.f32.partialorder %v67_v22, 1.0 }
  0x21   :  { %v70_v23 = vsel %vm68_vm4, 1.0, %v232_v2  ;;  %v75_v24 = vsel %vm68_vm4, 0.0, %v66_v21  ;;  %v71_v25 = vsel %vm69_vm5, 1.0, %v232_v2  ;;  %v76_v26 = vsel %vm69_vm5, 0.0, %v67_v22 }
  0x22   :  { %73 = vst [vmem:[#allocation6 + $0x20] sm:$0xff] %v70_v23  ;;  %v77_v29 = vmul.f32 0.5, %v75_v24  ;;  %74 = vst [vmem:[#allocation6 + $0x28] sm:$0xff] %v71_v25  ;;  %v78_v30 = vmul.f32 0.5, %v76_v26 }
  0x24   :  { %v82_v31 = vadd.f32 %v80_v27, %v77_v29  ;;  %v83_v32 = vadd.f32 %v81_v28, %v78_v30 }
  0x26   :  { %vm84_vm6 = vcmp.gt.f32.partialorder %v82_v31, 1.0  ;;  %vm85_vm7 = vcmp.gt.f32.partialorder %v83_v32, 1.0 }
  0x27   :  { %v86_v33 = vsel %vm84_vm6, 1.0, %v232_v2  ;;  %v91_v34 = vsel %vm84_vm6, 0.0, %v82_v31  ;;  %v87_v35 = vsel %vm85_vm7, 1.0, %v232_v2  ;;  %v92_v36 = vsel %vm85_vm7, 0.0, %v83_v32 }
  0x28   :  { %89 = vst [vmem:[#allocation6 + $0x30] sm:$0xff] %v86_v33  ;;  %v93_v39 = vmul.f32 0.5, %v91_v34  ;;  %90 = vst [vmem:[#allocation6 + $0x38] sm:$0xff] %v87_v35  ;;  %v94_v40 = vmul.f32 0.5, %v92_v36 }
  0x2a   :  { %v98_v41 = vadd.f32 %v96_v37, %v93_v39  ;;  %v99_v42 = vadd.f32 %v97_v38, %v94_v40 }
  0x2c   :  { %vm100_vm8 = vcmp.gt.f32.partialorder %v98_v41, 1.0  ;;  %vm101_vm9 = vcmp.gt.f32.partialorder %v99_v42, 1.0 }
  0x2d   :  { %v102_v43 = vsel %vm100_vm8, 1.0, %v232_v2  ;;  %v107_v44 = vsel %vm100_vm8, 0.0, %v98_v41  ;;  %v103_v45 = vsel %vm101_vm9, 1.0, %v232_v2  ;;  %v108_v46 = vsel %vm101_vm9, 0.0, %v99_v42 }
  0x2e   :  { %105 = vst [vmem:[#allocation6 + $0x40] sm:$0xff] %v102_v43  ;;  %v109_v49 = vmul.f32 0.5, %v107_v44  ;;  %106 = vst [vmem:[#allocation6 + $0x48] sm:$0xff] %v103_v45  ;;  %v110_v50 = vmul.f32 0.5, %v108_v46 }
  0x30   :  { %v114_v51 = vadd.f32 %v112_v47, %v109_v49  ;;  %v115_v52 = vadd.f32 %v113_v48, %v110_v50 }
  0x32   :  { %vm116_vm10 = vcmp.gt.f32.partialorder %v114_v51, 1.0  ;;  %vm117_vm11 = vcmp.gt.f32.partialorder %v115_v52, 1.0 }
  0x33   :  { %v118_v53 = vsel %vm116_vm10, 1.0, %v232_v2  ;;  %v123_v54 = vsel %vm116_vm10, 0.0, %v114_v51  ;;  %v119_v55 = vsel %vm117_vm11, 1.0, %v232_v2  ;;  %v124_v56 = vsel %vm117_vm11, 0.0, %v115_v52 }
  0x34   :  { %121 = vst [vmem:[#allocation6 + $0x50] sm:$0xff] %v118_v53  ;;  %v125_v59 = vmul.f32 0.5, %v123_v54  ;;  %122 = vst [vmem:[#allocation6 + $0x58] sm:$0xff] %v119_v55  ;;  %v126_v60 = vmul.f32 0.5, %v124_v56 }
  0x36   :  { %v130_v61 = vadd.f32 %v128_v57, %v125_v59  ;;  %v131_v62 = vadd.f32 %v129_v58, %v126_v60 }
  0x38   :  { %vm132_vm12 = vcmp.gt.f32.partialorder %v130_v61, 1.0  ;;  %vm133_vm13 = vcmp.gt.f32.partialorder %v131_v62, 1.0 }
  0x39   :  { %v134_v63 = vsel %vm132_vm12, 1.0, %v232_v2  ;;  %v139_v0 = vsel %vm132_vm12, 0.0, %v130_v61  ;;  %v135_v1 = vsel %vm133_vm13, 1.0, %v232_v2  ;;  %v140_v3 = vsel %vm133_vm13, 0.0, %v131_v62 }
  0x3a   :  { %137 = vst [vmem:[#allocation6 + $0x60] sm:$0xff] %v134_v63  ;;  %v141_v6 = vmul.f32 0.5, %v139_v0  ;;  %138 = vst [vmem:[#allocation6 + $0x68] sm:$0xff] %v135_v1  ;;  %v142_v7 = vmul.f32 0.5, %v140_v3 }
  0x3c   :  { %v146_v8 = vadd.f32 %v144_v4, %v141_v6  ;;  %v147_v9 = vadd.f32 %v145_v5, %v142_v7 }
  0x3e   :  { %vm148_vm14 = vcmp.gt.f32.partialorder %v146_v8, 1.0  ;;  %vm149_vm15 = vcmp.gt.f32.partialorder %v147_v9, 1.0 }
  0x3f   :  { %v150_v10 = vsel %vm148_vm14, 1.0, %v232_v2  ;;  %v151_v11 = vsel %vm149_vm15, 1.0, %v232_v2 }
  0x40   :  { %153 = vst [vmem:[#allocation6 + $0x70] sm:$0xff] %v150_v10  ;;  %154 = vst [vmem:[#allocation6 + $0x78] sm:$0xff] %v151_v11 }
  0x41   :  { %214 = shalt.err (!%p211_p12)
}
  0x42   :  { %s215_s24 = scalar_lea.hbm %s291_s1, 2048 }
  0x43   :  { %p216_p13 = scmp.ne.s32.totalorder %s291_s1, %s215_s24  ;;  %p219_p0 = scmp.lt.u32.totalorder %s215_s24, %s291_s1 }
  0x45   :  { %p221_p1 = pnand %p219_p0, %p216_p13 }
  0x47   :  { %224 = shalt.err (!%p221_p1)
}
  0x48   :  { %170 = dma.vmem_to_hbm [thread:$0]  %s165_s20, 2048, %s291_s1, [#allocation5], %s230_s16, %s230_s16, %s231_s17  }
  0x49   :  { %227 = dma.done.wait [#allocation5], 2048  }
  0x4a   :  { %228 = vsyncadd [#allocation5], 4294965248 }
  0x4b   :  { %174 = vsyncpa [#allocation4], 1 }
  0x4c   :  { %175 = vsyncpa [#allocation5], 1 }

</bundles_post_ra>
